<compile_context>
chip_gen: v5e
topology: v5e:2x2
jax: 0.10.0
libtpu: 0.0.40
codegen_flags: <defaults>
</compile_context>

<pallas_src>
import functools

import jax
import jax.numpy as jnp
from jax import lax
from jax.experimental import pallas as pl
from jax.experimental.pallas import tpu as pltpu


def _product_kernel_body(x1_ref, x2_ref, w_ref, out_ref, *, cast_bf16):
    # x1_ref: (1, TN, D), x2_ref: (1, TM, D), w_ref: (1, 1, D), out_ref: (1, TN, TM)
    w = w_ref[0].astype(jnp.float32)                 # (1, D) fused inverse lengthscale
    a = x1_ref[0].astype(jnp.float32) * w            # (TN, D)
    b = x2_ref[0].astype(jnp.float32) * w            # (TM, D)

    a2 = jnp.sum(a * a, axis=-1, keepdims=True)      # (TN, 1)
    b2 = jnp.sum(b * b, axis=-1)[None, :]            # (1, TM)

    # ||a - b||^2 = |a|^2 + |b|^2 - 2 a.b ; contraction on the last dim of both
    # operands, so the RHS tile is never explicitly transposed.
    if cast_bf16:
        am, bm = a.astype(jnp.bfloat16), b.astype(jnp.bfloat16)
    else:
        am, bm = a, b
    cross = lax.dot_general(
        am, bm, dimension_numbers=(((1,), (1,)), ((), ())),
        preferred_element_type=jnp.float32)          # (TN, TM)

    sqdist = jnp.maximum(a2 + b2 - 2.0 * cross, 0.0)
    # Single fused exp == product of the two RBF sub-kernel matrices.
    out_ref[0] = jnp.exp(-0.5 * sqdist).astype(out_ref.dtype)


def _round_up(x, m):
    return ((x + m - 1) // m) * m


def product_kernel(x1, x2, log_lengthscale1, log_lengthscale2,
                   *, tn_pref=1024, tm_pref=2048, out_dtype=jnp.float32):
    """ProductKernel([RBF(ls1), RBF(ls2)])(x1, x2).

    x1: (B, N, D), x2: (B, M, D), log_lengthscale*: (1, 1, D)
    returns: (B, N, M) in `out_dtype` (float32 by default).
    """
    B, N, D = x1.shape
    B2, M, D2 = x2.shape
    assert B == B2 and D == D2, "x1 and x2 must have the same batch / feature dims"

    # Fuse the two ARD RBF sub-kernels: exp(-.5 s1) * exp(-.5 s2)
    #   = exp(-.5 * sum_d (r1_d^2 + r2_d^2) (a_d - b_d)^2),  r_i = 1/ls_i.
    # Hoisted out of the kernel so it is computed once, not per grid step.
    w = jnp.sqrt(jnp.exp(-2.0 * log_lengthscale1) +
                 jnp.exp(-2.0 * log_lengthscale2)).astype(jnp.float32)  # (1,1,D)

    # Lane-dense output tiles: TM multiple of 128, TN multiple of 8.
    tn_pref = max(8, (tn_pref // 8) * 8)
    tm_pref = max(128, (tm_pref // 128) * 128)
    TN = min(tn_pref, _round_up(N, 8))
    TM = min(tm_pref, _round_up(M, 128))

    # Pad N/M up to tile multiples (instead of a full-dim fallback) so every
    # store is an unmasked 128-lane vst and VMEM stays bounded on all chips.
    Np = _round_up(N, TN)
    Mp = _round_up(M, TM)
    if Np != N:
        x1 = jnp.pad(x1, ((0, 0), (0, Np - N), (0, 0)))
    if Mp != M:
        x2 = jnp.pad(x2, ((0, 0), (0, Mp - M), (0, 0)))

    # bf16 MXU path only when it matters (large D) or inputs already bf16.
    cast_bf16 = (D >= 128) or (x1.dtype == jnp.bfloat16) or (x2.dtype == jnp.bfloat16)

    # Explicit VMEM budget: double-buffered output tiles dominate.  Setting it
    # lets the large tiles compile on v5e (16 MiB scoped default) while staying
    # comfortably under v7x's 64 MiB physical VMEM.
    out_item = jnp.dtype(out_dtype).itemsize
    in_item = max(jnp.dtype(x1.dtype).itemsize, 4)
    vmem_needed = 2 * TN * TM * out_item + 2 * (TN + TM + 1) * D * in_item
    vmem_limit = int(min(max(32 << 20, 2 * vmem_needed + (4 << 20)), 60 << 20))

    # Grid: N-tiles leading (best candidate for the v7x 2-core split), batch in
    # the middle, M-tiles innermost so the x1 block and w stay resident.
    grid = (Np // TN, B, Mp // TM)

    out = pl.pallas_call(
        functools.partial(_product_kernel_body, cast_bf16=cast_bf16),
        out_shape=jax.ShapeDtypeStruct((B, Np, Mp), out_dtype),
        grid_spec=pltpu.PrefetchScalarGridSpec(
            num_scalar_prefetch=0,
            grid=grid,
            in_specs=[
                pl.BlockSpec((1, TN, D), lambda i, b, j: (b, i, 0)),
                pl.BlockSpec((1, TM, D), lambda i, b, j: (b, j, 0)),
                pl.BlockSpec((1, 1, D), lambda i, b, j: (0, 0, 0)),
            ],
            out_specs=pl.BlockSpec((1, TN, TM), lambda i, b, j: (b, i, j)),
        ),
        compiler_params=pltpu.CompilerParams(
            # All grid axes independent (no reduction axis) -> megacore-shardable.
            dimension_semantics=("parallel", "parallel", "parallel"),
            vmem_limit_bytes=vmem_limit,
        ),
    )(x1, x2, w)

    if Np != N or Mp != M:
        out = out[:, :N, :M]
    return out
    # TODO(synk): for GP solves, fuse this kernel matrix directly into its
    # consumer (e.g. K @ v) to remove the B*N*M HBM writeback entirely.


def _reference(x1, x2, ls1, ls2):
    """Plain-JAX reference: literal ProductKernel (product of the two RBFs)."""
    out = jnp.ones((x1.shape[0], x1.shape[1], x2.shape[1]), jnp.float32)
    for log_ls in (ls1, ls2):
        inv = jnp.exp(-log_ls[0, 0])                        # (D,)
        a = x1 * inv
        b = x2 * inv
        diff = a[:, :, None, :] - b[:, None, :, :]
        sq = jnp.sum(diff * diff, axis=-1)
        out = out * jnp.exp(-0.5 * sq)
    return out


if __name__ == "__main__":
    key = jax.random.PRNGKey(0)
    k1, k2 = jax.random.split(key)

    B, N, M, D = 2, 16, 16, 8
    x1 = jax.random.normal(k1, (B, N, D), dtype=jnp.float32)
    x2 = jax.random.normal(k2, (B, M, D), dtype=jnp.float32)

    # Deterministic parameter init (shapes per Kernel.__init__ with
    # batch_size=1, ard_num_dims=D): log_lengthscale ~ (1, 1, D).
    log_lengthscale1 = jnp.zeros((1, 1, D), dtype=jnp.float32)       # lengthscale = 1
    log_lengthscale2 = jnp.full((1, 1, D), 0.5, dtype=jnp.float32)   # lengthscale = e^0.5

    out = product_kernel(x1, x2, log_lengthscale1, log_lengthscale2)
    out = jax.block_until_ready(out)

    ref = _reference(x1, x2, log_lengthscale1, log_lengthscale2)
    assert out.shape == (B, N, M)
    assert jnp.allclose(out, ref, atol=1e-5, rtol=1e-5), "mismatch vs reference"

    print("KERNEL_OK")
</pallas_src>

<mosaic_0001>
module attributes {stable_mosaic.version = 11 : i64} {
  func.func @_product_kernel_body(%arg0: i32, %arg1: i32, %arg2: i32, %arg3: memref<1x16x8xf32, #tpu.memory_space<vmem>>, %arg4: memref<1x128x8xf32, #tpu.memory_space<vmem>>, %arg5: memref<1x1x8xf32, #tpu.memory_space<vmem>>, %arg6: memref<1x16x128xf32, #tpu.memory_space<vmem>>) attributes {dimension_semantics = [#tpu.dimension_semantics<parallel>, #tpu.dimension_semantics<parallel>, #tpu.dimension_semantics<parallel>], iteration_bounds = array<i64: 1, 2, 1>, scalar_prefetch = 0 : i64, scratch_operands = 0 : i64, tpu.core_type = #tpu.core_type<tc>, window_params = [{transform_indices = @transform_0, window_bounds = array<i64: 1, 16, 8>}, {transform_indices = @transform_1, window_bounds = array<i64: 1, 128, 8>}, {pipeline_mode = #tpu.pipeline_mode<synchronous>, transform_indices = @transform_2, window_bounds = array<i64: 1, 1, 8>}, {transform_indices = @transform_3, window_bounds = array<i64: 1, 16, 128>}]} {
    %c0 = arith.constant 0 : index
    %c0_0 = arith.constant 0 : index
    %c0_1 = arith.constant 0 : index
    %0 = vector.load %arg5[%c0, %c0_0, %c0_1] : memref<1x1x8xf32, #tpu.memory_space<vmem>>, vector<1x1x8xf32>
    %1 = vector.shape_cast %0 : vector<1x1x8xf32> to vector<1x8xf32>
    %c0_2 = arith.constant 0 : index
    %c0_3 = arith.constant 0 : index
    %c0_4 = arith.constant 0 : index
    %2 = vector.load %arg3[%c0_2, %c0_3, %c0_4] : memref<1x16x8xf32, #tpu.memory_space<vmem>>, vector<1x16x8xf32>
    %3 = vector.shape_cast %2 : vector<1x16x8xf32> to vector<16x8xf32>
    %4 = vector.broadcast %1 : vector<1x8xf32> to vector<16x8xf32>
    %5 = arith.mulf %3, %4 : vector<16x8xf32>
    %c0_5 = arith.constant 0 : index
    %c0_6 = arith.constant 0 : index
    %c0_7 = arith.constant 0 : index
    %6 = vector.load %arg4[%c0_5, %c0_6, %c0_7] : memref<1x128x8xf32, #tpu.memory_space<vmem>>, vector<1x128x8xf32>
    %7 = vector.shape_cast %6 : vector<1x128x8xf32> to vector<128x8xf32>
    %8 = vector.broadcast %1 : vector<1x8xf32> to vector<128x8xf32>
    %9 = arith.mulf %7, %8 : vector<128x8xf32>
    %10 = arith.mulf %5, %5 : vector<16x8xf32>
    %cst = arith.constant dense<0.000000e+00> : vector<16xf32>
    %11 = vector.multi_reduction <add>, %10, %cst [1] : vector<16x8xf32> to vector<16xf32>
    %12 = vector.shape_cast %11 : vector<16xf32> to vector<16x1xf32>
    %13 = arith.mulf %9, %9 : vector<128x8xf32>
    %cst_8 = arith.constant dense<0.000000e+00> : vector<128xf32>
    %14 = vector.multi_reduction <add>, %13, %cst_8 [1] : vector<128x8xf32> to vector<128xf32>
    %15 = vector.shape_cast %14 : vector<128xf32> to vector<1x128xf32>
    %cst_9 = arith.constant dense<0.000000e+00> : vector<16x128xf32>
    %16 = tpu.matmul %5, %9, %cst_9 {dimension_numbers = #tpu.dot_dimension_numbers<[1], [1], [0], [0], [0, 0, 1, 0], [], []>} : vector<16x8xf32>, vector<128x8xf32>, vector<16x128xf32> -> vector<16x128xf32>
    %17 = vector.broadcast %12 : vector<16x1xf32> to vector<16x128xf32>
    %18 = vector.broadcast %15 : vector<1x128xf32> to vector<16x128xf32>
    %19 = arith.addf %17, %18 : vector<16x128xf32>
    %cst_10 = arith.constant 2.000000e+00 : f32
    %20 = vector.broadcast %cst_10 : f32 to vector<16x128xf32>
    %21 = arith.mulf %20, %16 : vector<16x128xf32>
    %22 = arith.subf %19, %21 : vector<16x128xf32>
    %cst_11 = arith.constant 0.000000e+00 : f32
    %23 = vector.broadcast %cst_11 : f32 to vector<16x128xf32>
    %24 = arith.maximumf %22, %23 : vector<16x128xf32>
    %cst_12 = arith.constant -5.000000e-01 : f32
    %25 = vector.broadcast %cst_12 : f32 to vector<16x128xf32>
    %26 = arith.mulf %25, %24 : vector<16x128xf32>
    %27 = math.exp %26 : vector<16x128xf32>
    %c0_13 = arith.constant 0 : index
    %c0_14 = arith.constant 0 : index
    %c0_15 = arith.constant 0 : index
    %28 = vector.load %arg6[%c0_13, %c0_14, %c0_15] : memref<1x16x128xf32, #tpu.memory_space<vmem>>, vector<1x16x128xf32>
    %29 = vector.shape_cast %28 : vector<1x16x128xf32> to vector<16x128xf32>
    %30 = vector.shape_cast %27 : vector<16x128xf32> to vector<1x16x128xf32>
    tpu.vector_store %arg6[%c0_13, %c0_14, %c0_15], %30 {strides = array<i32>} : memref<1x16x128xf32, #tpu.memory_space<vmem>>, vector<1x16x128xf32>,
    return
  }
  func.func @transform_0(%arg0: i32, %arg1: i32, %arg2: i32) -> (i32, i32, i32) {
    %c0_i32 = arith.constant 0 : i32
    %c0_i32_0 = arith.constant 0 : i32
    return %arg1, %arg0, %c0_i32 : i32, i32, i32
  }
  func.func @transform_1(%arg0: i32, %arg1: i32, %arg2: i32) -> (i32, i32, i32) {
    %c0_i32 = arith.constant 0 : i32
    %c0_i32_0 = arith.constant 0 : i32
    return %arg1, %arg2, %c0_i32 : i32, i32, i32
  }
  func.func @transform_2(%arg0: i32, %arg1: i32, %arg2: i32) -> (i32, i32, i32) {
    %c0_i32 = arith.constant 0 : i32
    %c0_i32_0 = arith.constant 0 : i32
    %c0_i32_1 = arith.constant 0 : i32
    %c0_i32_2 = arith.constant 0 : i32
    return %c0_i32, %c0_i32_0, %c0_i32_1 : i32, i32, i32
  }
  func.func @transform_3(%arg0: i32, %arg1: i32, %arg2: i32) -> (i32, i32, i32) {
    %c0_i32 = arith.constant 0 : i32
    return %arg1, %arg0, %arg2 : i32, i32, i32
  }
}

</mosaic_0001>

<bundles_post_ra>
// kernel: tpu_custom_call.1
= control target key start
LH: loop header
LB: loop body
LE: loop exit
PB: predicated region body
PF: predicated region fallthrough
CT: control target
= control target key end

     0   :  { %8 = vsyncpa [#allocation3], 0  ;;  %s1142_s0 = inlined_call_operand.vmem [shape: f32[2,16,8], index: 0, kind: input, shape index: {}]   ;;  %s1143_s1 = inlined_call_operand.vmem [shape: f32[2,128,8], index: 1, kind: input, shape index: {}]   ;;  %s1144_s2 = inlined_call_operand.vmem [shape: f32[1,1,8], index: 2, kind: input, shape index: {}]   ;;  %s1145_s3 = inlined_call_operand.hbm [shape: f32[2,16,128], index: 3, kind: output, shape index: {}]  }
   0x1   :  { %10 = vsyncpa [#allocation3 + $0x1], 0  ;;  %s879_s12 = smov 0   ;;  %s881_s13 = smov 0  }
   0x2   :  { %s883_s14 = smov 0   ;;  %s885_s15 = smov 0  }
   0x3   :  { %s887_s16 = smov 0   ;;  %s889_s17 = smov 0  }
   0x4 LB: > { %s663_s18 = sadd.s32 4294967295, %s855_s17   ;;  %s664_s19 = sadd.s32 4294967294, %s855_s17   ;;  %s855_s17 = sphi %s889_s17, %s16_s17   ;;  %s851_s16 = sphi %s887_s16, %s1152_s16   ;;  %s847_s15 = sphi %s885_s15, %s1151_s15   ;;  %s843_s14 = sphi %s883_s14, %s1150_s14   ;;  %s839_s13 = sphi %s881_s13, %s1149_s13   ;;  %s835_s12 = sphi %s879_s12, %s1148_s12  }
   0x5   : > { %s31_s20 = sadd.s32 1, %s851_s16  ;;  %s123_s21 = sadd.s32 1, %s843_s14 }
   0x6   : > { %p33_p0 = scmp.ge.s32.totalorder %s31_s20, 2  ;;  %p133_p1 = scmp.ne.s32.totalorder %s843_s14, %s839_s13 }
   0x7   : > { %p134_p2 = scmp.eq.s32.totalorder %s663_s18, 1  ;;  %p139_p3 = scmp.ne.s32.totalorder %s839_s13, %s835_s12 }
   0x8   : > { %s1154_s20 = smov (%p33_p0, %s31_s20), 0  ;;  %p140_p5 = scmp.eq.s32.totalorder %s664_s19, 1 }
   0x9   : > { %p919_p4 = por %p134_p2, %p133_p1  ;;  %s116_s23 = ssub.s32 %s851_s16, %s1154_s20 }
   0xa   : > { %p667_p6 = scmp.ge.s32.totalorder %s855_s17, 1  ;;  %p121_p7 = scmp.eq.s32.totalorder %s116_s23, 0 }
   0xb   : > { %p926_p8 = por %p140_p5, %p139_p3  ;;  %p187_p9 = scmp.lt.s32.totalorder %s855_s17, 3 }
   0xc   : > { %s932_s25 = scalar_select %p121_p7, %s843_s14, %s123_s21  }
   0xd   : > { %p188_p10 = pnand %p667_p6, %p187_p9 }
   0xe   : > { %p225_p11 = scmp.lt.s32.totalorder (!%p188_p10), %s847_s15, 1  ;;  %s221_s10 = sand.u32 (!%p188_p10), 1, %s839_s13  }
   0xf   : > { %191 = sbr.rel (%p188_p10) target bundleno = 238 (0xee), region = 32  ;;  %s668_s11 = sshll.u32 (!%p188_p10), %s221_s10, 4 }
  0x10   : > { %s698_s18 = sshll.u32 (!%p188_p10), %s847_s15, 4 }
  0x11   : > { %s558_s23 = scalar_lea.hbm (!%p188_p10), %s1145_s3, %s698_s18 }
  0x12   : > { %s561_s28 = sshll.u32 (!%p188_p10), %s558_s23, 4  ;;  %s562_s28 = int_to_ptr.hbm [resolvable:$true] %s561_s28 }
  0x14   : > { %s936_s26 = scalar_select %p225_p11, %s847_s15, 1  ;;  %v941_v0 = vld [vmem:[%s1144_s2] ss:$0 sm:$0xff]  ;;  %vm287_vm0 = vcmask 64512   ;;  %vm456_vm1 = vcmask 130112   ;;  %vm460_vm2 = vcmask 195712  }
  0x15   : > { %vm464_vm3 = vcmask 261312   ;;  %vm468_vm4 = vcmask 326912   ;;  %vm472_vm5 = vcmask 392512   ;;  %vm476_vm6 = vcmask 458112   ;;  %s791_s15 = sshra.s32 %s562_s28, 4  ;;  %s792_s15 = int_to_ptr.hbm [resolvable:$true] %s791_s15 }
  0x16   : > { %s697_s29 = sshll.u32 %s936_s26, 7  ;;  %s696_s6 = sshll.u32 %s936_s26, 4  ;;  %vm480_vm7 = vcmask 523712   ;;  %vm484_vm8 = vcmask 589312   ;;  %vm488_vm9 = vcmask 654912   ;;  %vm492_vm10 = vcmask 720512  }
  0x17   : > { %s947_s5 = scalar_lea.vmem %s1143_s1, %s697_s29  ;;  %s232_s9 = scalar_lea.vmem %s1142_s0, %s696_s6  ;;  %vm496_vm11 = vcmask 786112   ;;  %vm500_vm12 = vcmask 851712   ;;  %vm504_vm13 = vcmask 917312   ;;  %vm508_vm14 = vcmask 982912  }
  0x18   : > { %v268_v1 = vld [vmem:[%s947_s5 + $0x78] sm:$0xff]  ;;  %v267_v2 = vld [vmem:[%s947_s5 + $0x70] sm:$0xff]  ;;  %v253_v3 = vld [vmem:[%s947_s5] sm:$0xff]  ;;  %vm512_vm15 = vcmask 1048512   ;;  %s223_s26 = scalar_lea.vmem [#allocation2], %s668_s11  ;;  %s544_s29 = scalar_lea.sflag [#allocation3], %s221_s10 }
  0x19   : > { %v953_v4 = vmul.f32 %v941_v0, %v268_v1  ;;  %v956_v5 = vmul.f32 %v941_v0, %v253_v3  ;;  %v257_v6 = vld [vmem:[%s947_s5 + $0x20] sm:$0xff]  ;;  %v255_v7 = vld [vmem:[%s947_s5 + $0x10] sm:$0xff]  ;;  %v254_v10 = vld [vmem:[%s947_s5 + $0x8] sm:$0xff]  ;;  %v973_v12 = vmul.f32 %v941_v0, %v267_v2  ;;  %s559_s27 = sshll.u32 %s223_s26, 4  ;;  %s793_s30 = scalar_lea.hbm %s792_s15, 16  ;;  %s560_s27 = int_to_ptr.vmem [resolvable:$true] %s559_s27 }
  0x1a   : > { %v961_v8 = vmul.f32 %v941_v0, %v257_v6  ;;  %v964_v9 = vmul.f32 %v941_v0, %v255_v7  ;;  %v258_v11 = vld [vmem:[%s947_s5 + $0x28] sm:$0xff]  ;;  %v978_v14 = vmul.f32 %v941_v0, %v254_v10  ;;  %v256_v15 = vld [vmem:[%s947_s5 + $0x18] sm:$0xff]  ;;  %v265_v26 = vld [vmem:[%s947_s5 + $0x60] sm:$0xff]  ;;  %p794_p12 = scmp.ne.s32.totalorder %s792_s15, %s793_s30  ;;  %s797_s6 = scalar_lea.hbm %s1145_s3, 32 }
  0x1b   : > { %673 = vmatpush.xpose.msk.msra.mxu0 %vm287_vm0, %v953_v4  ;;  %699 = vmatpush.xpose.msk.msra.mxu1 %vm287_vm0, %v953_v4  ;;  %v294_v13 = vmul.f32 %v956_v5, %v956_v5  ;;  %v266_v18 = vld [vmem:[%s947_s5 + $0x68] sm:$0xff]  ;;  %v988_v20 = vmul.f32 %v941_v0, %v258_v11  ;;  %v991_v21 = vmul.f32 %v941_v0, %v256_v15  ;;  %v259_v27 = vld [vmem:[%s947_s5 + $0x30] sm:$0xff]  ;;  %v261_v30 = vld [vmem:[%s947_s5 + $0x40] sm:$0xff]  ;;  %p798_p1 = scmp.lt.s32.totalorder %s792_s15, %s1145_s3  ;;  %p799_p2 = scmp.lt.s32.totalorder %s797_s6, %s793_s30 }
  0x1c   : > { %v298_v16 = vmul.f32 %v961_v8, %v961_v8  ;;  %v296_v17 = vmul.f32 %v964_v9, %v964_v9  ;;  %v282_v24 = vmul.f32 %v941_v0, %v266_v18  ;;  %v295_v25 = vmul.f32 %v978_v14, %v978_v14  ;;  %v260_v31 = vld [vmem:[%s947_s5 + $0x38] sm:$0xff]  ;;  %v263_v42 = vld [vmem:[%s947_s5 + $0x50] sm:$0xff]  ;;  %v262_v43 = vld [vmem:[%s947_s5 + $0x48] sm:$0xff]  ;;  %p795_p13 = pnand %p794_p12, %p919_p4 }
  0x1d   : > { %v310_v19 = vsel %vm287_vm0, %v294_v13, 0.0  ;;  %v299_v28 = vmul.f32 %v988_v20, %v988_v20  ;;  %v297_v29 = vmul.f32 %v991_v21, %v991_v21  ;;  %v281_v32 = vmul.f32 %v941_v0, %v265_v26  ;;  %v264_v35 = vld [vmem:[%s947_s5 + $0x58] sm:$0xff]  ;;  %v247_v60 = vld [vmem:[%s232_s9 + $0x8] sm:$0xff]  ;;  %v246_v61 = vld [vmem:[%s232_s9] sm:$0xff]  ;;  %p800_p3 = por %p799_p2, %p798_p1 }
  0x1e   : > { %311 = vadd.xlane.f32.xlu0 %v310_v19  ;;  %v322_v22 = vsel %vm287_vm0, %v298_v16, 0.0  ;;  %v316_v23 = vsel %vm287_vm0, %v296_v17, 0.0  ;;  %v313_v33 = vsel %vm287_vm0, %v295_v25, 0.0  ;;  %v275_v34 = vmul.f32 %v941_v0, %v259_v27  ;;  %p796_p0 = pneg %p795_p13 }
  0x1f   : > { %674 = vmatpush.xpose.msk.msra.mxu0 %vm287_vm0, %v973_v12  ;;  %700 = vmatpush.xpose.msk.msra.mxu1 %vm287_vm0, %v973_v12  ;;  %v325_v36 = vsel %vm287_vm0, %v299_v28, 0.0  ;;  %v319_v37 = vsel %vm287_vm0, %v297_v29, 0.0  ;;  %v277_v38 = vmul.f32 %v941_v0, %v261_v30  ;;  %v276_v39 = vmul.f32 %v941_v0, %v260_v31 }
  0x20   : > { %323 = vadd.xlane.f32.xlu2 %v322_v22  ;;  %317 = vadd.xlane.f32.xlu1 %v316_v23  ;;  %v280_v40 = vmul.f32 %v941_v0, %v264_v35  ;;  %v300_v41 = vmul.f32 %v275_v34, %v275_v34  ;;  %v279_v46 = vmul.f32 %v941_v0, %v263_v42  ;;  %p801_p5 = pnand %p800_p3, %p796_p0 }
  0x21   : > { %v302_v44 = vmul.f32 %v277_v38, %v277_v38  ;;  %v301_v45 = vmul.f32 %v276_v39, %v276_v39  ;;  %v278_v48 = vmul.f32 %v941_v0, %v262_v43  ;;  %v306_v57 = vmul.f32 %v281_v32, %v281_v32 }
  0x22   : > { %v328_v47 = vsel %vm287_vm0, %v300_v41, 0.0  ;;  %v305_v52 = vmul.f32 %v280_v40, %v280_v40  ;;  %v304_v53 = vmul.f32 %v279_v46, %v279_v46  ;;  %v308_v58 = vmul.f32 %v973_v12, %v973_v12 }
  0x23   : > { %675 = vmatpush.xpose.msk.msra.mxu0 %vm287_vm0, %v282_v24  ;;  %701 = vmatpush.xpose.msk.msra.mxu1 %vm287_vm0, %v282_v24  ;;  %v334_v49 = vsel %vm287_vm0, %v302_v44, 0.0  ;;  %v331_v50 = vsel %vm287_vm0, %v301_v45, 0.0  ;;  %v303_v51 = vmul.f32 %v278_v48, %v278_v48  ;;  %v307_v59 = vmul.f32 %v282_v24, %v282_v24 }
  0x24   : > { %v343_v55 = vsel %vm287_vm0, %v305_v52, 0.0  ;;  %v340_v56 = vsel %vm287_vm0, %v304_v53, 0.0  ;;  %v346_v62 = vsel %vm287_vm0, %v306_v57, 0.0  ;;  %v352_v63 = vsel %vm287_vm0, %v308_v58, 0.0 }
  0x25   : > { %v337_v54 = vsel %vm287_vm0, %v303_v51, 0.0  ;;  %v349_v1 = vsel %vm287_vm0, %v307_v59, 0.0  ;;  %v252_v2 = vmul.f32 %v941_v0, %v247_v60  ;;  %v251_v3 = vmul.f32 %v941_v0, %v246_v61 }
  0x26   : > { %314 = vadd.xlane.f32.xlu0 %v313_v33  ;;  %v309_v6 = vmul.f32 %v953_v4, %v953_v4  ;;  %v451_v4 = vlaneseq }
  0x27   : > { %676 = vmatpush.xpose.msk.msra.mxu0 %vm287_vm0, %v281_v32  ;;  %702 = vmatpush.xpose.msk.msra.mxu1 %vm287_vm0, %v281_v32  ;;  %v286_v7 = vmul.f32 %v252_v2, %v252_v2  ;;  %v285_v10 = vmul.f32 %v251_v3, %v251_v3 }
  0x28   : > { %326 = vadd.xlane.f32.xlu2 %v325_v36  ;;  %320 = vadd.xlane.f32.xlu1 %v319_v37  ;;  %v355_v0 = vsel %vm287_vm0, %v309_v6, 0.0  ;;  %v1087_v13 = vand.u32 127, %v451_v4 }
  0x29   : > { %v291_v11 = vsel %vm287_vm0, %v286_v7, 0.0  ;;  %v288_v12 = vsel %vm287_vm0, %v285_v10, 0.0 }
  0x2a   : > { %v454_v16 = vadd.s32 4294967288, %v1087_v13  ;;  %v466_v22 = vadd.s32 4294967264, %v1087_v13  ;;  %v470_v27 = vadd.s32 4294967256, %v1087_v13  ;;  %v474_v31 = vadd.s32 4294967248, %v1087_v13 }
  0x2b   : > { %677 = vmatpush.xpose.msk.msra.mxu0 %vm287_vm0, %v280_v40  ;;  %703 = vmatpush.xpose.msk.msra.mxu1 %vm287_vm0, %v280_v40  ;;  %v486_v43 = vadd.s32 4294967224, %v1087_v13  ;;  %v502_v58 = vadd.s32 4294967192, %v1087_v13  ;;  %v506_v61 = vadd.s32 4294967184, %v1087_v13 }
  0x2e   : > { %329 = vadd.xlane.f32.xlu0 %v328_v47 }
  0x2f   : > { %678 = vmatpush.xpose.msk.msra.mxu0 %vm287_vm0, %v279_v46  ;;  %704 = vmatpush.xpose.msk.msra.mxu1 %vm287_vm0, %v279_v46  ;;  %v490_v46 = vadd.s32 4294967216, %v1087_v13 }
  0x30   : > { %335 = vadd.xlane.f32.xlu2 %v334_v49  ;;  %332 = vadd.xlane.f32.xlu1 %v331_v50  ;;  %v494_v50 = vadd.s32 4294967208, %v1087_v13 }
  0x33   : > { %679 = vmatpush.xpose.msk.msra.mxu0 %vm287_vm0, %v278_v48  ;;  %705 = vmatpush.xpose.msk.msra.mxu1 %vm287_vm0, %v278_v48 }
  0x36   : > { %338 = vadd.xlane.f32.xlu0 %v337_v54  ;;  %v498_v54 = vadd.s32 4294967200, %v1087_v13 }
  0x37   : > { %680 = vmatpush.xpose.msk.msra.mxu0 %vm287_vm0, %v277_v38  ;;  %706 = vmatpush.xpose.msk.msra.mxu1 %vm287_vm0, %v277_v38 }
  0x38   : > { %344 = vadd.xlane.f32.xlu2 %v343_v55  ;;  %341 = vadd.xlane.f32.xlu1 %v340_v56 }
  0x3b   : > { %681 = vmatpush.xpose.msk.msra.mxu0 %vm287_vm0, %v276_v39  ;;  %707 = vmatpush.xpose.msk.msra.mxu1 %vm287_vm0, %v276_v39  ;;  %v482_v39 = vadd.s32 4294967232, %v1087_v13 }
  0x3e   : > { %347 = vadd.xlane.f32.xlu0 %v346_v62 }
  0x3f   : > { %682 = vmatpush.xpose.msk.msra.mxu0 %vm287_vm0, %v275_v34  ;;  %708 = vmatpush.xpose.msk.msra.mxu1 %vm287_vm0, %v275_v34  ;;  %v478_v34 = vadd.s32 4294967240, %v1087_v13 }
  0x40   : > { %353 = vadd.xlane.f32.xlu2 %v352_v63  ;;  %350 = vadd.xlane.f32.xlu1 %v349_v1 }
  0x43   : > { %683 = vmatpush.xpose.msk.msra.mxu0 %vm287_vm0, %v988_v20  ;;  %709 = vmatpush.xpose.msk.msra.mxu1 %vm287_vm0, %v988_v20 }
  0x46   : > { %356 = vadd.xlane.f32.xlu0 %v355_v0 }
  0x47   : > { %684 = vmatpush.xpose.msk.msra.mxu0 %vm287_vm0, %v961_v8  ;;  %710 = vmatpush.xpose.msk.msra.mxu1 %vm287_vm0, %v961_v8 }
  0x48   : > { %292 = vadd.xlane.f32.xlu2 %v291_v11  ;;  %289 = vadd.xlane.f32.xlu1 %v288_v12 }
  0x4b   : > { %685 = vmatpush.xpose.msk.msra.mxu0 %vm287_vm0, %v991_v21  ;;  %711 = vmatpush.xpose.msk.msra.mxu1 %vm287_vm0, %v991_v21 }
  0x4f   : > { %686 = vmatpush.xpose.msk.msra.mxu0 %vm287_vm0, %v964_v9  ;;  %712 = vmatpush.xpose.msk.msra.mxu1 %vm287_vm0, %v964_v9 }
  0x53   : > { %687 = vmatpush.xpose.msk.msra.mxu0 %vm287_vm0, %v978_v14  ;;  %713 = vmatpush.xpose.msk.msra.mxu1 %vm287_vm0, %v978_v14  ;;  %v458_v14 = vadd.s32 4294967280, %v1087_v13 }
  0x57   : > { %688 = vmatpush.xpose.msk.msra.mxu0 %vm287_vm0, %v956_v5  ;;  %714 = vmatpush.xpose.msk.msra.mxu1 %vm287_vm0, %v956_v5  ;;  %v462_v5 = vadd.s32 4294967272, %v1087_v13 }
  0x5a   : > { %689 = vmatmul.msk.f32.vlgmr.msra.gmra.mxu0 %vm287_vm0, %v251_v3  ;;  %690 = vmatmul.msk.f32.vlgmr.msra.gmra.mxu1 %vm287_vm0, %v252_v2  ;;  %v510_v3 = vadd.s32 4294967176, %v1087_v13 }
  0x91   : > { %v312_v8 = vpop.xlane.xlu0 %311 }
  0x92   : > { %v453_v18 = vperm.slane %v312_v8, %v1087_v13 }
  0x93   : > { %v318_v9 = vpop.xlane.xlu1 %317  ;;  %v324_v15 = vpop.xlane.xlu2 %323 }
  0x94   : > { %v459_v20 = vperm.slane %v318_v9, %v458_v14  ;;  %v467_v28 = vperm.slane %v324_v15, %v466_v22 }
  0x99   : > { %v315_v17 = vpop.xlane.xlu0 %314 }
  0x9a   : > { %v455_v19 = vperm.slane %v315_v17, %v454_v16 }
  0x9b   : > { %v321_v23 = vpop.xlane.xlu1 %320  ;;  %v327_v24 = vpop.xlane.xlu2 %326 }
  0x9c   : > { %v457_v21 = vsel %vm456_vm1, %v455_v19, %v453_v18  ;;  %v463_v25 = vperm.slane %v321_v23, %v462_v5  ;;  %v471_v32 = vperm.slane %v327_v24, %v470_v27 }
  0x9d   : > { %v461_v26 = vsel %vm460_vm2, %v459_v20, %v457_v21 }
  0x9e   : > { %v465_v30 = vsel %vm464_vm3, %v463_v25, %v461_v26 }
  0x9f   : > { %v469_v33 = vsel %vm468_vm4, %v467_v28, %v465_v30 }
  0xa0   : > { %v473_v37 = vsel %vm472_vm5, %v471_v32, %v469_v33 }
  0xa1   : > { %v330_v29 = vpop.xlane.xlu0 %329 }
  0xa2   : > { %v475_v35 = vperm.slane %v330_v29, %v474_v31 }
  0xa3   : > { %v333_v36 = vpop.xlane.xlu1 %332  ;;  %v336_v38 = vpop.xlane.xlu2 %335 }
  0xa4   : > { %v479_v40 = vperm.slane %v333_v36, %v478_v34  ;;  %v477_v41 = vsel %vm476_vm6, %v475_v35, %v473_v37  ;;  %v483_v44 = vperm.slane %v336_v38, %v482_v39 }
  0xa6   : > { %v481_v45 = vsel %vm480_vm7, %v479_v40, %v477_v41 }
  0xa7   : > { %v485_v48 = vsel %vm484_vm8, %v483_v44, %v481_v45 }
  0xa9   : > { %v339_v42 = vpop.xlane.xlu0 %338 }
  0xaa   : > { %v487_v47 = vperm.slane %v339_v42, %v486_v43 }
  0xab   : > { %v342_v49 = vpop.xlane.xlu1 %341  ;;  %v345_v51 = vpop.xlane.xlu2 %344 }
  0xac   : > { %v491_v52 = vperm.slane %v342_v49, %v490_v46  ;;  %v489_v53 = vsel %vm488_vm9, %v487_v47, %v485_v48  ;;  %v495_v56 = vperm.slane %v345_v51, %v494_v50 }
  0xae   : > { %v493_v57 = vsel %vm492_vm10, %v491_v52, %v489_v53 }
  0xaf   : > { %v497_v60 = vsel %vm496_vm11, %v495_v56, %v493_v57 }
  0xb1   : > { %v348_v55 = vpop.xlane.xlu0 %347 }
  0xb2   : > { %v499_v59 = vperm.slane %v348_v55, %v498_v54 }
  0xb3   : > { %v351_v62 = vpop.xlane.xlu1 %350  ;;  %v354_v63 = vpop.xlane.xlu2 %353 }
  0xb4   : > { %v503_v1 = vperm.slane %v351_v62, %v502_v58  ;;  %v501_v2 = vsel %vm500_vm12, %v499_v59, %v497_v60  ;;  %v507_v6 = vperm.slane %v354_v63, %v506_v61 }
  0xb6   : > { %v505_v10 = vsel %vm504_vm13, %v503_v1, %v501_v2 }
  0xb7   : > { %v509_v11 = vsel %vm508_vm14, %v507_v6, %v505_v10 }
  0xb9   : > { %v357_v7 = vpop.xlane.xlu0 %356 }
  0xba   : > { %v511_v0 = vperm.slane %v357_v7, %v510_v3 }
  0xbb   : > { %v293_v4 = vpop.xlane.xlu2 %292  ;;  %v290_v8 = vpop.xlane.xlu1 %289 }
  0xbc   : > { %v513_v12 = vsel %vm512_vm15, %v511_v0, %v509_v11 }
  0xbd   : > { %v528_v16 = vadd.f32 %v513_v12, %v293_v4  ;;  %v527_v14 = vadd.f32 %v513_v12, %v290_v8 }
  0xd7   : > { %v429_v9 = vpop.f32.mrf.mxu0  ;;  %v432_v15 = vpop.f32.mrf.mxu1 }
  0xd8   : > { %v529_v17 = vmul.f32 2.0, %v429_v9  ;;  %v530_v18 = vmul.f32 2.0, %v432_v15 }
  0xda   : > { %v531_v19 = vsub.f32 %v527_v14, %v529_v17  ;;  %v532_v13 = vsub.f32 %v528_v16, %v530_v18 }
  0xdc   : > { %v533_v5 = vmax.f32 %v531_v19, 0.0  ;;  %v534_v20 = vmax.f32 %v532_v13, 0.0 }
  0xde   : > { %v535_v21 = vmul.f32 -0.5, %v533_v5  ;;  %v536_v22 = vmul.f32 -0.5, %v534_v20 }
  0xe0   : > { %v537_v23 = vmul.f32 1.442695, %v535_v21  ;;  %v539_v24 = vmul.f32 1.442695, %v536_v22 }
  0xe2   : > { %773 = vpow2.f32 %v537_v23 }
  0xe3   : > { %775 = vpow2.f32 %v539_v24 }
  0xe8   : > { %v774_v25 = vpop.eup %773 }
  0xe9   : > { %v776_v26 = vpop.eup %775  ;;  %541 = vst [vmem:[%s223_s26] sm:$0xff] %v774_v25 }
  0xea   : > { %542 = vst [vmem:[%s223_s26 + $0x8] sm:$0xff] %v776_v26 }
  0xeb   : > { %804 = shalt.err (!%p801_p5)
}
  0xec   : > { %s857_s9 = smov 128   ;;  %s858_s10 = smov 8  }
  0xed   : > { %715 = dma.vmem_to_hbm [thread:$0]  (%p919_p4), %s560_s27, 256, %s562_s28, %s544_s29, %s857_s9, %s857_s9, %s858_s10  }
  0xee PF: > { %p721_p6 = scmp.ge.s32.totalorder %s855_s17, 2  ;;  %s576_s11 = sand.u32 1, %s835_s12  }
  0xef   : > { %s577_s18 = scalar_lea.sflag [#allocation3], %s576_s11 }
  0xf0   : > { %p718_p7 = pnand %p721_p6, %p926_p8 }
  0xf2   : > { %p719_p9 = pneg %p718_p7 }
  0xf4   : > { %830 = dma.done.wait (%p719_p9), %s577_s18, 256  }
  0xf5   : > { %832 = vsyncadd (%p719_p9), %s577_s18, 4294967040  ;;  %s16_s17 = sadd.s32 1, %s855_s17   ;;  %s1148_s12 = smov %s839_s13 }
  0xf6   : > { %p13_p10 = scmp.ge.s32.totalorder %s16_s17, 4   ;;  %s1149_s13 = smov %s843_s14 }
  0xf7   : > { %s1150_s14 = smov %s932_s25  ;;  %s1151_s15 = smov %s851_s16 }
  0xf8   : > { %s1152_s16 = smov %s1154_s20  ;;  %15 = sbr.rel (!%p13_p10) target bundleno = 4 (0x4), region = 70 }
  0xfd   :  { %583 = vsyncpa [#allocation3], 1 }
  0xfe   :  { %585 = vsyncpa [#allocation3 + $0x1], 1 }

</bundles_post_ra>
